<compile_context>
chip_gen: v7x
topology: tpu7x:2x2x1
jax: 0.10.0
libtpu: 0.0.40
codegen_flags: <defaults>
</compile_context>

<pallas_src>
from functools import partial

import jax
import jax.numpy as jnp
from jax import lax
from jax.experimental import pallas as pl
from jax.experimental.pallas import tpu as pltpu

EPS = 1e-5            # nn.BatchNorm2d default eps
NEG_SLOPE = 0.1       # LeakyReLU(0.1)
ROW_ALIGN = 16        # row-tile alignment (native bf16 sublane tile)
DEFAULT_TILE_M = 4096


def _round_up(x, m):
    return (x + m - 1) // m * m


def _vmem_budget():
    """Per-generation VMEM working-set budget / scoped limit (bytes)."""
    try:
        cap = int(getattr(pltpu.get_tpu_info(), "vmem_capacity_bytes"))
    except Exception:
        cap = 64 * 1024 * 1024          # conservative (v7x-sized) fallback
    cap = max(cap, 32 * 1024 * 1024)
    budget = min(int(cap * 0.70), 96 * 1024 * 1024)    # ~45 MiB on v7x, ~90 MiB on v5e/v6e
    limit = min(int(cap * 0.80), 110 * 1024 * 1024)
    return budget, limit


VMEM_BUDGET, VMEM_LIMIT = _vmem_budget()


def _const_block_spec(block_shape, index_map):
    """BlockSpec for a block whose index_map is constant: single-buffer it (it is only
    DMA'd once), reclaiming VMEM for bigger row tiles on deep layers."""
    try:
        return pl.BlockSpec(block_shape, index_map, pipeline_mode=pl.Buffered(1))
    except Exception:   # older jax without pipeline_mode / Buffered
        return pl.BlockSpec(block_shape, index_map)


def _choose_rows_pass1(requested, kp, coutp, budget):
    """Largest pass-1 row tile (multiple of ROW_ALIGN) whose working set fits the budget."""
    fixed = kp * coutp * 2 + 2 * 8 * coutp * 4            # 1x bf16 weight + 2x f32 stats
    per_row = 2 * kp * 2 + 2 * coutp * 2 + coutp * 4      # 2x bf16 patches + 2x bf16 y + f32 acc
    avail = max(budget - fixed, per_row * ROW_ALIGN)
    tm = min(requested, avail // per_row)
    if tm >= 128:
        tm = (tm // 128) * 128
    return max(ROW_ALIGN, (tm // ROW_ALIGN) * ROW_ALIGN)


def _choose_rows_pass2(total_rows, coutp, budget, target=4096):
    """Largest divisor of total_rows (multiple of ROW_ALIGN) under budget / target rows."""
    per_row = 2 * coutp * 2 + 2 * coutp * 4               # 2x bf16 in + 2x f32 out
    limit = min(total_rows, max(ROW_ALIGN, budget // per_row), target)
    if total_rows >= 2 * ROW_ALIGN:                       # keep >= 2 steps for megacore
        limit = min(limit, max(ROW_ALIGN, total_rows // 2))
    limit -= limit % ROW_ALIGN
    for rows in range(limit, ROW_ALIGN - 1, -ROW_ALIGN):
        if total_rows % rows == 0:
            return rows
    return total_rows                                     # unreachable: 16 | total_rows


# --------------------------------------------------------------------------------------
# Kernels
# --------------------------------------------------------------------------------------
def _im2col_conv_stats_kernel(patch_ref, w_ref, y_ref, stats_ref):
    """Pass 1 (small-Cin path): one im2col matmul per row tile + BN partial stats.

    patch_ref : (TM, Kp)      bf16   im2col rows for this tile
    w_ref     : (Kp, Coutp)   bf16   weights (constant block, single-buffered)
    y_ref     : (TM, Coutp)   bf16   conv output tile
    stats_ref : (8, Coutp)    f32    row 0 = sum, row 1 = sum of squares
    """
    acc = jnp.dot(patch_ref[...], w_ref[...], preferred_element_type=jnp.float32)
    coutp = acc.shape[1]
    stats_ref[...] = jnp.concatenate(
        [jnp.sum(acc, axis=0, keepdims=True),
         jnp.sum(acc * acc, axis=0, keepdims=True),
         jnp.zeros((6, coutp), jnp.float32)], axis=0)
    y_ref[...] = acc.astype(y_ref.dtype)


def _taps_conv_stats_kernel(x_ref, w_ref, y_ref, stats_ref, *, kh_taps, kw_taps,
                            wp, ho, wo):
    """Pass 1 (large-Cin path): KH*KW shifted matmuls over the flat padded row layout.

    x_ref     : (rows_in, Cinp)       bf16  one image's zero-padded NHWC rows, flattened
    w_ref     : (KH*KW, Cinp, Coutp)  bf16  per-tap weights (constant block, single-buffered)
    y_ref     : (R_out, Coutp)        bf16  conv output on the padded flat grid
    stats_ref : (8, Coutp)            f32   row 0 = sum, row 1 = sum of squares (valid rows)
    """
    r_out, coutp = y_ref.shape
    acc = jnp.zeros((r_out, coutp), jnp.float32)
    for kh in range(kh_taps):
        for kw in range(kw_taps):
            off = kh * wp + kw                                   # static tap offset
            acc = acc + jnp.dot(x_ref[off:off + r_out, :],
                                w_ref[kh * kw_taps + kw],
                                preferred_element_type=jnp.float32)
    # Rows of the padded flat grid that correspond to real output pixels.
    q = lax.broadcasted_iota(jnp.int32, (r_out, 1), 0)
    valid = jnp.logical_and(q < ho * wp, q % wp < wo)
    accm = jnp.where(valid, acc, 0.0)
    stats_ref[...] = jnp.concatenate(
        [jnp.sum(accm, axis=0, keepdims=True),
         jnp.sum(accm * accm, axis=0, keepdims=True),
         jnp.zeros((6, coutp), jnp.float32)], axis=0)
    y_ref[...] = acc.astype(y_ref.dtype)     # invalid rows are stripped in the wrapper


def _bn_lrelu_kernel(y_ref, scale_ref, shift_ref, o_ref):
    """Pass 2: folded BN affine (y*scale + shift) followed by LeakyReLU(0.1)."""
    z = y_ref[...].astype(jnp.float32) * scale_ref[...] + shift_ref[...]
    o_ref[...] = jnp.where(z > 0, z, NEG_SLOPE * z)


# --------------------------------------------------------------------------------------
# Wrapper
# --------------------------------------------------------------------------------------
@partial(jax.jit, static_argnames=("padding", "tile_m"))
def cnn_block(x_nchw, weight_oihw, gamma, beta, *, padding=1, tile_m=None):
    """CNNBlock forward: Conv2d(s=1, bias=False) -> BN (train-mode stats) -> LeakyReLU."""
    N, Cin, H, W = x_nchw.shape
    Cout, Cin_w, KH, KW = weight_oihw.shape
    assert Cin == Cin_w
    Ho = H + 2 * padding - KH + 1
    Wo = W + 2 * padding - KW + 1
    Hp, Wp = Ho + KH - 1, Wo + KW - 1
    M = N * Ho * Wo

    lane = 256 if Cout >= 256 else 128        # 256-wide MXU on v6e/v7x; 128 suffices on v5e
    cin_lane = 256 if Cin >= 256 else 128
    Coutp = _round_up(Cout, lane)
    # TODO(synk): layers with Cout < 128 pay a large lane-padding tax here; they are better
    # served by XLA's conv or by packing a spatial group g into lanes (g*Cout == 128).

    x_nhwc = jnp.transpose(x_nchw, (0, 2, 3, 1)).astype(jnp.float32)
    xp = jnp.pad(x_nhwc, ((0, 0), (padding, padding), (padding, padding), (0, 0)))

    g = jnp.pad(gamma.astype(jnp.float32), (0, Coutp - Cout))
    b = jnp.pad(beta.astype(jnp.float32), (0, Coutp - Cout))

    # ------------------- pass 1: conv + per-block BN partial stats -------------------
    use_taps = False
    if Cin >= 128:
        Cinp = _round_up(Cin, cin_lane)
        R_out = _round_up(Hp * Wp, ROW_ALIGN)              # padded flat grid per image
        rows_in = _round_up(R_out + (KH - 1) * Wp + (KW - 1), ROW_ALIGN)
        taps = KH * KW
        use_taps = (2 * rows_in * Cinp * 2 + taps * Cinp * Coutp * 2
                    + 2 * R_out * Coutp * 2 + 2 * R_out * Coutp * 4
                    + 2 * 8 * Coutp * 4) <= VMEM_BUDGET
        # TODO(synk): when one image's rows don't fit the VMEM budget (very large feature
        # maps), tile the flat row axis with a (KH-1)*Wp halo instead of falling back.

    if use_taps:
        # Large-Cin path: in-kernel tap accumulation; no patch matrix ever hits HBM.
        xflat = xp.reshape(N, Hp * Wp, Cin)
        xflat = jnp.pad(xflat, ((0, 0), (0, rows_in - Hp * Wp), (0, Cinp - Cin)))
        xflat = xflat.astype(jnp.bfloat16)
        w = jnp.transpose(weight_oihw, (2, 3, 1, 0)).reshape(taps, Cin, Cout)
        w = jnp.pad(w, ((0, 0), (0, Cinp - Cin), (0, Coutp - Cout))).astype(jnp.bfloat16)

        n_blocks = N                       # grid over images; N>=2 keeps both v7x cores busy
        Rp = N * R_out
        kernel = partial(_taps_conv_stats_kernel, kh_taps=KH, kw_taps=KW,
                         wp=Wp, ho=Ho, wo=Wo)
        cost = pl.CostEstimate(
            flops=2 * N * R_out * taps * Cinp * Coutp, transcendentals=0,
            bytes_accessed=(N * rows_in * Cinp * 2 + taps * Cinp * Coutp * 2
                            + Rp * Coutp * 2 + n_blocks * 8 * Coutp * 4))
        y, stats = pl.pallas_call(
            kernel,
            out_shape=(jax.ShapeDtypeStruct((Rp, Coutp), jnp.bfloat16),
                       jax.ShapeDtypeStruct((n_blocks * 8, Coutp), jnp.float32)),
            grid_spec=pltpu.PrefetchScalarGridSpec(
                num_scalar_prefetch=0,
                grid=(N,),
                in_specs=[pl.BlockSpec((None, rows_in, Cinp), lambda n: (n, 0, 0)),
                          _const_block_spec((taps, Cinp, Coutp), lambda n: (0, 0, 0))],
                out_specs=[pl.BlockSpec((R_out, Coutp), lambda n: (n, 0)),
                           pl.BlockSpec((8, Coutp), lambda n: (n, 0))]),
            compiler_params=pltpu.CompilerParams(
                dimension_semantics=("parallel",),
                vmem_limit_bytes=VMEM_LIMIT),
            cost_estimate=cost,
        )(xflat, w)
    else:
        # Small-Cin path (lane-sparse first layers): wrapper-side im2col, one matmul/tile.
        K = KH * KW * Cin
        Kp = _round_up(K, 128)
        tm = _choose_rows_pass1(tile_m or DEFAULT_TILE_M, Kp, Coutp, VMEM_BUDGET)
        tm = min(tm, max(ROW_ALIGN, _round_up(pl.cdiv(M, 2), ROW_ALIGN)))   # >= 2 grid steps
        Mp = _round_up(M, tm)
        n_blocks = Mp // tm
        Rp = Mp

        taps_l = [xp[:, kh:kh + Ho, kw:kw + Wo, :] for kh in range(KH) for kw in range(KW)]
        patches = jnp.concatenate(taps_l, axis=-1).reshape(M, K)      # features = (kh,kw,cin)
        patches = jnp.pad(patches, ((0, Mp - M), (0, Kp - K))).astype(jnp.bfloat16)
        w = jnp.transpose(weight_oihw, (2, 3, 1, 0)).reshape(K, Cout)
        w = jnp.pad(w, ((0, Kp - K), (0, Coutp - Cout))).astype(jnp.bfloat16)

        cost = pl.CostEstimate(
            flops=2 * Mp * Kp * Coutp, transcendentals=0,
            bytes_accessed=(Mp * Kp * 2 + Kp * Coutp * 2 + Mp * Coutp * 2
                            + n_blocks * 8 * Coutp * 4))
        y, stats = pl.pallas_call(
            _im2col_conv_stats_kernel,
            out_shape=(jax.ShapeDtypeStruct((Mp, Coutp), jnp.bfloat16),
                       jax.ShapeDtypeStruct((n_blocks * 8, Coutp), jnp.float32)),
            grid_spec=pltpu.PrefetchScalarGridSpec(
                num_scalar_prefetch=0,
                grid=(n_blocks,),
                in_specs=[pl.BlockSpec((tm, Kp), lambda i: (i, 0)),
                          _const_block_spec((Kp, Coutp), lambda i: (0, 0))],
                out_specs=[pl.BlockSpec((tm, Coutp), lambda i: (i, 0)),
                           pl.BlockSpec((8, Coutp), lambda i: (i, 0))]),
            compiler_params=pltpu.CompilerParams(
                dimension_semantics=("parallel",),
                vmem_limit_bytes=VMEM_LIMIT),
            cost_estimate=cost,
        )(patches, w)

    # ---------- tiny wrapper reduction: global train-mode batch statistics ----------
    # Padded / invalid rows contribute exactly zero to the partials (zero patches, no
    # bias, explicit in-kernel masking on the tap path), so dividing by the true M is
    # correct.  NOTE: E[y^2]-E[y]^2 in f32 can cancel for very large M / large-mean
    # channels; the clamp guards the sign (a centered two-pass reduction would be more
    # robust for huge feature maps).
    st = stats.reshape(n_blocks, 8, Coutp)
    total = jnp.sum(st[:, 0, :], axis=0)
    total_sq = jnp.sum(st[:, 1, :], axis=0)
    cnt = jnp.float32(M)
    mean = total / cnt
    var = jnp.maximum(total_sq / cnt - mean * mean, 0.0)
    inv = lax.rsqrt(var + EPS)
    scale = (g * inv).reshape(1, Coutp)
    shift = (b - mean * g * inv).reshape(1, Coutp)

    # ------------------- pass 2: folded BN affine + LeakyReLU -------------------
    tm2 = _choose_rows_pass2(Rp, Coutp, VMEM_BUDGET)
    cost2 = pl.CostEstimate(flops=3 * Rp * Coutp, transcendentals=0,
                            bytes_accessed=Rp * Coutp * (2 + 4) + 2 * Coutp * 4)
    out2d = pl.pallas_call(
        _bn_lrelu_kernel,
        out_shape=jax.ShapeDtypeStruct((Rp, Coutp), jnp.float32),
        grid_spec=pltpu.PrefetchScalarGridSpec(
            num_scalar_prefetch=0,
            grid=(Rp // tm2,),
            in_specs=[pl.BlockSpec((tm2, Coutp), lambda i: (i, 0)),
                      pl.BlockSpec((1, Coutp), lambda i: (0, 0)),
                      pl.BlockSpec((1, Coutp), lambda i: (0, 0))],
            out_specs=pl.BlockSpec((tm2, Coutp), lambda i: (i, 0))),
        compiler_params=pltpu.CompilerParams(
            dimension_semantics=("parallel",),
            vmem_limit_bytes=VMEM_LIMIT),
        cost_estimate=cost2,
    )(y, scale, shift)

    # strip padding rows/channels and return NCHW
    if use_taps:
        out = out2d.reshape(N, R_out, Coutp)[:, :Hp * Wp, :Cout]
        out = out.reshape(N, Hp, Wp, Cout)[:, :Ho, :Wo, :]
    else:
        out = out2d[:M, :Cout].reshape(N, Ho, Wo, Cout)
    return jnp.transpose(out, (0, 3, 1, 2))


# TODO(synk): nn.BatchNorm2d also updates running_mean / running_var buffers as a training
# side effect; the forward output does not depend on them in train mode, so they are not
# produced here.
def reference_forward(x_nchw, weight_oihw, gamma, beta, padding=1):
    """Pure-JAX reference matching PyTorch CNNBlock forward (train-mode BN, f32)."""
    y = lax.conv_general_dilated(
        x_nchw.astype(jnp.float32), weight_oihw.astype(jnp.float32),
        window_strides=(1, 1), padding=((padding, padding), (padding, padding)),
        dimension_numbers=("NCHW", "OIHW", "NCHW"))
    mean = jnp.mean(y, axis=(0, 2, 3), keepdims=True)
    var = jnp.mean((y - mean) ** 2, axis=(0, 2, 3), keepdims=True)
    yn = (y - mean) * lax.rsqrt(var + EPS)
    yn = yn * gamma.reshape(1, -1, 1, 1) + beta.reshape(1, -1, 1, 1)
    return jnp.where(yn > 0, yn, NEG_SLOPE * yn)


if __name__ == "__main__":
    key = jax.random.PRNGKey(0)
    k1, k2, k3, k4, k5, k6, k7, k8 = jax.random.split(key, 8)

    # ---- test 1: lane-sparse first layer (wrapper im2col path), multi-step grid ----
    N, Cin, H, W = 2, 4, 16, 16
    Cout, KH, KW = 8, 3, 3
    x = jax.random.normal(k1, (N, Cin, H, W), dtype=jnp.float32)
    w = 0.1 * jax.random.normal(k2, (Cout, Cin, KH, KW), dtype=jnp.float32)
    gm = 1.0 + 0.1 * jax.random.normal(k3, (Cout,), dtype=jnp.float32)
    bt = 0.1 * jax.random.normal(k4, (Cout,), dtype=jnp.float32)
    # tile_m=128 only to exercise a multi-step grid (M=512 -> 4 tiles) at this toy size.
    out = jax.block_until_ready(cnn_block(x, w, gm, bt, padding=1, tile_m=128))
    ref = jax.block_until_ready(reference_forward(x, w, gm, bt, padding=1))
    assert out.shape == ref.shape == (N, Cout, H, W)
    err = float(jnp.max(jnp.abs(out - ref)))
    assert err < 1e-1, f"im2col-path max abs err {err}"

    # ---- test 2: Cin >= 128 (in-kernel tap-accumulation path) ----
    N2, Cin2, H2, W2, Cout2 = 2, 128, 8, 8, 128
    x2 = jax.random.normal(k5, (N2, Cin2, H2, W2), dtype=jnp.float32)
    w2 = 0.05 * jax.random.normal(k6, (Cout2, Cin2, KH, KW), dtype=jnp.float32)
    gm2 = 1.0 + 0.1 * jax.random.normal(k7, (Cout2,), dtype=jnp.float32)
    bt2 = 0.1 * jax.random.normal(k8, (Cout2,), dtype=jnp.float32)
    out2 = jax.block_until_ready(cnn_block(x2, w2, gm2, bt2, padding=1))
    ref2 = jax.block_until_ready(reference_forward(x2, w2, gm2, bt2, padding=1))
    assert out2.shape == ref2.shape == (N2, Cout2, H2, W2)
    err2 = float(jnp.max(jnp.abs(out2 - ref2)))
    assert err2 < 1.5e-1, f"tap-path max abs err {err2}"

    print("KERNEL_OK")
</pallas_src>

<mosaic_0001>
module attributes {stable_mosaic.version = 11 : i64} {
  func.func @_im2col_conv_stats_kernel(%arg0: i32, %arg1: memref<128x128xbf16, #tpu.memory_space<vmem>>, %arg2: memref<128x128xbf16, #tpu.memory_space<vmem>>, %arg3: memref<128x128xbf16, #tpu.memory_space<vmem>>, %arg4: memref<8x128xf32, #tpu.memory_space<vmem>>) attributes {dimension_semantics = [#tpu.dimension_semantics<parallel>], iteration_bounds = array<i64: 4>, scalar_prefetch = 0 : i64, scratch_operands = 0 : i64, tpu.core_type = #tpu.core_type<tc>, window_params = [{transform_indices = @transform_0, window_bounds = array<i64: 128, 128>}, {pipeline_mode = #tpu.pipeline_mode<synchronous>, transform_indices = @transform_1, window_bounds = array<i64: 128, 128>}, {transform_indices = @transform_2, window_bounds = array<i64: 128, 128>}, {transform_indices = @transform_3, window_bounds = array<i64: 8, 128>}]} {
    %c0 = arith.constant 0 : index
    %c0_0 = arith.constant 0 : index
    %0 = vector.load %arg1[%c0, %c0_0] : memref<128x128xbf16, #tpu.memory_space<vmem>>, vector<128x128xbf16>
    %c0_1 = arith.constant 0 : index
    %c0_2 = arith.constant 0 : index
    %1 = vector.load %arg2[%c0_1, %c0_2] : memref<128x128xbf16, #tpu.memory_space<vmem>>, vector<128x128xbf16>
    %cst = arith.constant dense<0.000000e+00> : vector<128x128xf32>
    %2 = tpu.matmul %0, %1, %cst {dimension_numbers = #tpu.dot_dimension_numbers<[1], [0], [0], [1], [0, 0, 1, 1], [], []>} : vector<128x128xbf16>, vector<128x128xbf16>, vector<128x128xf32> -> vector<128x128xf32>
    %cst_3 = arith.constant dense<0.000000e+00> : vector<128xf32>
    %3 = vector.multi_reduction <add>, %2, %cst_3 [0] : vector<128x128xf32> to vector<128xf32>
    %4 = vector.shape_cast %3 : vector<128xf32> to vector<1x128xf32>
    %5 = arith.mulf %2, %2 : vector<128x128xf32>
    %cst_4 = arith.constant dense<0.000000e+00> : vector<128xf32>
    %6 = vector.multi_reduction <add>, %5, %cst_4 [0] : vector<128x128xf32> to vector<128xf32>
    %7 = vector.shape_cast %6 : vector<128xf32> to vector<1x128xf32>
    %cst_5 = arith.constant 0.000000e+00 : f32
    %8 = vector.broadcast %cst_5 : f32 to vector<6x128xf32>
    %9 = tpu.concatenate %4, %7, %8 in 0 : vector<1x128xf32>, vector<1x128xf32>, vector<6x128xf32> -> vector<8x128xf32>
    %c0_6 = arith.constant 0 : index
    %c0_7 = arith.constant 0 : index
    %10 = vector.load %arg4[%c0_6, %c0_7] : memref<8x128xf32, #tpu.memory_space<vmem>>, vector<8x128xf32>
    tpu.vector_store %arg4[%c0_6, %c0_7], %9 {strides = array<i32>} : memref<8x128xf32, #tpu.memory_space<vmem>>, vector<8x128xf32>,
    %11 = arith.truncf %2 : vector<128x128xf32> to vector<128x128xbf16>
    %c0_8 = arith.constant 0 : index
    %c0_9 = arith.constant 0 : index
    %12 = vector.load %arg3[%c0_8, %c0_9] : memref<128x128xbf16, #tpu.memory_space<vmem>>, vector<128x128xbf16>
    tpu.vector_store %arg3[%c0_8, %c0_9], %11 {strides = array<i32>} : memref<128x128xbf16, #tpu.memory_space<vmem>>, vector<128x128xbf16>,
    return
  }
  func.func @transform_0(%arg0: i32) -> (i32, i32) {
    %c0_i32 = arith.constant 0 : i32
    %c0_i32_0 = arith.constant 0 : i32
    return %arg0, %c0_i32 : i32, i32
  }
  func.func @transform_1(%arg0: i32) -> (i32, i32) {
    %c0_i32 = arith.constant 0 : i32
    %c0_i32_0 = arith.constant 0 : i32
    %c0_i32_1 = arith.constant 0 : i32
    return %c0_i32, %c0_i32_0 : i32, i32
  }
  func.func @transform_2(%arg0: i32) -> (i32, i32) {
    %c0_i32 = arith.constant 0 : i32
    %c0_i32_0 = arith.constant 0 : i32
    return %arg0, %c0_i32 : i32, i32
  }
  func.func @transform_3(%arg0: i32) -> (i32, i32) {
    %c0_i32 = arith.constant 0 : i32
    %c0_i32_0 = arith.constant 0 : i32
    return %arg0, %c0_i32 : i32, i32
  }
}

module attributes {stable_mosaic.version = 11 : i64} {
  func.func @_bn_lrelu_kernel(%arg0: i32, %arg1: memref<256x128xbf16, #tpu.memory_space<vmem>>, %arg2: memref<1x128xf32, #tpu.memory_space<vmem>>, %arg3: memref<1x128xf32, #tpu.memory_space<vmem>>, %arg4: memref<256x128xf32, #tpu.memory_space<vmem>>) attributes {dimension_semantics = [#tpu.dimension_semantics<parallel>], iteration_bounds = array<i64: 2>, scalar_prefetch = 0 : i64, scratch_operands = 0 : i64, tpu.core_type = #tpu.core_type<tc>, window_params = [{transform_indices = @transform_0, window_bounds = array<i64: 256, 128>}, {pipeline_mode = #tpu.pipeline_mode<synchronous>, transform_indices = @transform_1, window_bounds = array<i64: 1, 128>}, {pipeline_mode = #tpu.pipeline_mode<synchronous>, transform_indices = @transform_2, window_bounds = array<i64: 1, 128>}, {transform_indices = @transform_3, window_bounds = array<i64: 256, 128>}]} {
    %c0 = arith.constant 0 : index
    %c0_0 = arith.constant 0 : index
    %0 = vector.load %arg1[%c0, %c0_0] : memref<256x128xbf16, #tpu.memory_space<vmem>>, vector<256x128xbf16>
    %1 = arith.extf %0 : vector<256x128xbf16> to vector<256x128xf32>
    %c0_1 = arith.constant 0 : index
    %c0_2 = arith.constant 0 : index
    %2 = vector.load %arg2[%c0_1, %c0_2] : memref<1x128xf32, #tpu.memory_space<vmem>>, vector<1x128xf32>
    %3 = vector.broadcast %2 : vector<1x128xf32> to vector<256x128xf32>
    %4 = arith.mulf %1, %3 : vector<256x128xf32>
    %c0_3 = arith.constant 0 : index
    %c0_4 = arith.constant 0 : index
    %5 = vector.load %arg3[%c0_3, %c0_4] : memref<1x128xf32, #tpu.memory_space<vmem>>, vector<1x128xf32>
    %6 = vector.broadcast %5 : vector<1x128xf32> to vector<256x128xf32>
    %7 = arith.addf %4, %6 : vector<256x128xf32>
    %cst = arith.constant 0.000000e+00 : f32
    %8 = vector.broadcast %cst : f32 to vector<256x128xf32>
    %9 = arith.cmpf ogt, %7, %8 : vector<256x128xf32>
    %cst_5 = arith.constant 1.000000e-01 : f32
    %10 = vector.broadcast %cst_5 : f32 to vector<256x128xf32>
    %11 = arith.mulf %10, %7 : vector<256x128xf32>
    %12 = arith.select %9, %7, %11 : vector<256x128xi1>, vector<256x128xf32>
    %c0_6 = arith.constant 0 : index
    %c0_7 = arith.constant 0 : index
    %13 = vector.load %arg4[%c0_6, %c0_7] : memref<256x128xf32, #tpu.memory_space<vmem>>, vector<256x128xf32>
    tpu.vector_store %arg4[%c0_6, %c0_7], %12 {strides = array<i32>} : memref<256x128xf32, #tpu.memory_space<vmem>>, vector<256x128xf32>,
    return
  }
  func.func @transform_0(%arg0: i32) -> (i32, i32) {
    %c0_i32 = arith.constant 0 : i32
    %c0_i32_0 = arith.constant 0 : i32
    return %arg0, %c0_i32 : i32, i32
  }
  func.func @transform_1(%arg0: i32) -> (i32, i32) {
    %c0_i32 = arith.constant 0 : i32
    %c0_i32_0 = arith.constant 0 : i32
    %c0_i32_1 = arith.constant 0 : i32
    return %c0_i32, %c0_i32_0 : i32, i32
  }
  func.func @transform_2(%arg0: i32) -> (i32, i32) {
    %c0_i32 = arith.constant 0 : i32
    %c0_i32_0 = arith.constant 0 : i32
    %c0_i32_1 = arith.constant 0 : i32
    return %c0_i32, %c0_i32_0 : i32, i32
  }
  func.func @transform_3(%arg0: i32) -> (i32, i32) {
    %c0_i32 = arith.constant 0 : i32
    %c0_i32_0 = arith.constant 0 : i32
    return %arg0, %c0_i32 : i32, i32
  }
}

</mosaic_0001>

<bundles_post_ra>
// kernel: cnn_block.3
= control target key start
LH: loop header
LB: loop body
LE: loop exit
PB: predicated region body
PF: predicated region fallthrough
CT: control target
= control target key end

     0   :  { %s628_s12 = smov 0   ;;  %s775_s0 = inlined_call_operand.vmem [shape: bf16[512,128], index: 0, kind: input, shape index: {}]   ;;  %s776_s1 = inlined_call_operand.vmem [shape: f32[1,128], index: 1, kind: input, shape index: {}]   ;;  %s777_s2 = inlined_call_operand.vmem [shape: f32[1,128], index: 2, kind: input, shape index: {}]   ;;  %s778_s3 = inlined_call_operand.vmem [shape: f32[512,128], index: 3, kind: output, shape index: {}]  }
   0x1 LB: > { %s500_s13 = sadd.s32 4294967295, %s606_s12   ;;  %p504_p0 = scmp.ge.s32.totalorder %s606_s12, 1  ;;  %s606_s12 = sphi %s628_s12, %s13_s12  }
   0x2   : > { %p138_p1 = scmp.lt.s32.totalorder %s606_s12, 3 }
   0x4   : > { %p139_p2 = pnand %p504_p0, %p138_p1 }
   0x5   : > { %s505_s14 = sshll.u32 (!%p139_p2), %s500_s13, 5  ;;  %v647_v0 = vld [vmem:[%s776_s1] ss:$0 sm:$0xff] (!%p139_p2) }
   0x6   : > { %142 = sbr.rel (%p139_p2) target bundleno = 71 (0x47), region = 32  ;;  %p163_p3 = scmp.lt.s32.totalorder (!%p139_p2), %s505_s14, 63  ;;  %v656_v9 = vld [vmem:[%s777_s2] ss:$0 sm:$0xff] (!%p139_p2) }
   0xd   : > { %s780_s14 = smov (!%p163_p3, %s505_s14), 63 }
   0xe   : > { %s506_s15 = sshll.u32 %s780_s14, 2  ;;  %s508_s23 = sshll.u32 %s780_s14, 3 }
   0xf   : > { %s642_s18 = scalar_lea.vmem %s775_s0, %s506_s15  ;;  %s678_s26 = scalar_lea.vmem %s778_s3, %s508_s23 }
  0x10   : > { %v514_v1 = vld [vmem:[%s642_s18] sm:$0xff]   ;;  %v577_v2 = vld [vmem:[%s642_s18 + $0x8] sm:$0xff]   ;;  %v578_v3 = vld [vmem:[%s642_s18 + $0x10] sm:$0xff]  }
  0x11   : > { %v515_v4 = vunpack.c.l.bf16 %v514_v1  ;;  %v516_v5 = vunpack.c.h.bf16 %v514_v1  ;;  %v519_v6 = vunpack.c.l.bf16 %v577_v2  ;;  %v520_v7 = vunpack.c.h.bf16 %v577_v2  ;;  %v579_v8 = vld [vmem:[%s642_s18 + $0x18] sm:$0xff]   ;;  %v580_v37 = vld [vmem:[%s642_s18 + $0x20] sm:$0xff]   ;;  %v581_v41 = vld [vmem:[%s642_s18 + $0x28] sm:$0xff]  }
  0x12   : > { %v523_v10 = vunpack.c.l.bf16 %v578_v3  ;;  %v524_v11 = vunpack.c.h.bf16 %v578_v3  ;;  %v527_v12 = vunpack.c.l.bf16 %v579_v8  ;;  %v528_v13 = vunpack.c.h.bf16 %v579_v8  ;;  %v582_v42 = vld [vmem:[%s642_s18 + $0x30] sm:$0xff]   ;;  %v583_v49 = vld [vmem:[%s642_s18 + $0x38] sm:$0xff]  }
  0x13   : > { %v245_v14 = vmul.f32 %v515_v4, %v647_v0  ;;  %v246_v15 = vmul.f32 %v516_v5, %v647_v0  ;;  %v247_v16 = vmul.f32 %v519_v6, %v647_v0  ;;  %v248_v17 = vmul.f32 %v520_v7, %v647_v0  ;;  %v584_v7 = vld [vmem:[%s642_s18 + $0x40] sm:$0xff]  }
  0x14   : > { %v249_v18 = vmul.f32 %v523_v10, %v647_v0  ;;  %v250_v19 = vmul.f32 %v524_v11, %v647_v0  ;;  %v251_v20 = vmul.f32 %v527_v12, %v647_v0  ;;  %v252_v21 = vmul.f32 %v528_v13, %v647_v0 }
  0x15   : > { %v284_v22 = vadd.f32 %v656_v9, %v245_v14  ;;  %v285_v23 = vadd.f32 %v656_v9, %v246_v15  ;;  %v286_v24 = vadd.f32 %v656_v9, %v247_v16  ;;  %v287_v25 = vadd.f32 %v656_v9, %v248_v17 }
  0x16   : > { %v288_v26 = vadd.f32 %v656_v9, %v249_v18  ;;  %v289_v27 = vadd.f32 %v656_v9, %v250_v19  ;;  %v290_v28 = vadd.f32 %v656_v9, %v251_v20  ;;  %v291_v29 = vadd.f32 %v656_v9, %v252_v21  ;;  %v585_v20 = vld [vmem:[%s642_s18 + $0x48] sm:$0xff]  }
  0x17   : > { %vm316_vm0 = vcmp.gt.f32.partialorder %v284_v22, 0.0  ;;  %v348_v30 = vmul.f32 0.1, %v284_v22  ;;  %vm317_vm1 = vcmp.gt.f32.partialorder %v285_v23, 0.0  ;;  %v349_v31 = vmul.f32 0.1, %v285_v23 }
  0x18   : > { %vm318_vm2 = vcmp.gt.f32.partialorder %v286_v24, 0.0  ;;  %v350_v32 = vmul.f32 0.1, %v286_v24  ;;  %vm319_vm3 = vcmp.gt.f32.partialorder %v287_v25, 0.0  ;;  %v351_v33 = vmul.f32 0.1, %v287_v25 }
  0x19   : > { %v380_v34 = vsel %vm316_vm0, %v284_v22, %v348_v30  ;;  %v381_v35 = vsel %vm317_vm1, %v285_v23, %v349_v31  ;;  %vm320_vm4 = vcmp.gt.f32.partialorder %v288_v26, 0.0  ;;  %v352_v36 = vmul.f32 0.1, %v288_v26 }
  0x1a   : > { %412 = vst [vmem:[%s678_s26] sm:$0xff] %v380_v34  ;;  %413 = vst [vmem:[%s678_s26 + $0x8] sm:$0xff] %v381_v35  ;;  %v382_v38 = vsel %vm318_vm2, %v286_v24, %v350_v32  ;;  %v383_v39 = vsel %vm319_vm3, %v287_v25, %v351_v33  ;;  %vm321_vm5 = vcmp.gt.f32.partialorder %v289_v27, 0.0  ;;  %v353_v40 = vmul.f32 0.1, %v289_v27  ;;  %v586_v25 = vld [vmem:[%s642_s18 + $0x50] sm:$0xff]  }
  0x1b   : > { %414 = vst [vmem:[%s678_s26 + $0x10] sm:$0xff] %v382_v38  ;;  %415 = vst [vmem:[%s678_s26 + $0x18] sm:$0xff] %v383_v39  ;;  %v384_v43 = vsel %vm320_vm4, %v288_v26, %v352_v36  ;;  %vm322_vm6 = vcmp.gt.f32.partialorder %v290_v28, 0.0  ;;  %v354_v44 = vmul.f32 0.1, %v290_v28  ;;  %vm323_vm7 = vcmp.gt.f32.partialorder %v291_v29, 0.0 }
  0x1c   : > { %416 = vst [vmem:[%s678_s26 + $0x20] sm:$0xff] %v384_v43  ;;  %v385_v45 = vsel %vm321_vm5, %v289_v27, %v353_v40  ;;  %v355_v46 = vmul.f32 0.1, %v291_v29  ;;  %v531_v47 = vunpack.c.l.bf16 %v580_v37  ;;  %v532_v48 = vunpack.c.h.bf16 %v580_v37  ;;  %v587_v43 = vld [vmem:[%s642_s18 + $0x58] sm:$0xff]  }
  0x1d   : > { %417 = vst [vmem:[%s678_s26 + $0x28] sm:$0xff] %v385_v45  ;;  %v386_v50 = vsel %vm322_vm6, %v290_v28, %v354_v44  ;;  %v535_v51 = vunpack.c.l.bf16 %v581_v41  ;;  %v536_v52 = vunpack.c.h.bf16 %v581_v41  ;;  %v539_v53 = vunpack.c.l.bf16 %v582_v42 }
  0x1e   : > { %418 = vst [vmem:[%s678_s26 + $0x30] sm:$0xff] %v386_v50  ;;  %v387_v54 = vsel %vm323_vm7, %v291_v29, %v355_v46  ;;  %v253_v55 = vmul.f32 %v531_v47, %v647_v0  ;;  %v254_v56 = vmul.f32 %v532_v48, %v647_v0  ;;  %v540_v57 = vunpack.c.h.bf16 %v582_v42 }
  0x1f   : > { %419 = vst [vmem:[%s678_s26 + $0x38] sm:$0xff] %v387_v54  ;;  %v255_v58 = vmul.f32 %v535_v51, %v647_v0  ;;  %v256_v59 = vmul.f32 %v536_v52, %v647_v0  ;;  %v257_v60 = vmul.f32 %v539_v53, %v647_v0  ;;  %v543_v61 = vunpack.c.l.bf16 %v583_v49  ;;  %v588_v54 = vld [vmem:[%s642_s18 + $0x60] sm:$0xff]  }
  0x20   : > { %v292_v62 = vadd.f32 %v656_v9, %v253_v55  ;;  %v293_v63 = vadd.f32 %v656_v9, %v254_v56  ;;  %v258_v1 = vmul.f32 %v540_v57, %v647_v0  ;;  %v544_v2 = vunpack.c.h.bf16 %v583_v49 }
  0x21   : > { %v294_v3 = vadd.f32 %v656_v9, %v255_v58  ;;  %v295_v4 = vadd.f32 %v656_v9, %v256_v59  ;;  %v296_v5 = vadd.f32 %v656_v9, %v257_v60  ;;  %v259_v6 = vmul.f32 %v543_v61, %v647_v0 }
  0x22   : > { %vm324_vm8 = vcmp.gt.f32.partialorder %v292_v62, 0.0  ;;  %v356_v8 = vmul.f32 0.1, %v292_v62  ;;  %vm325_vm9 = vcmp.gt.f32.partialorder %v293_v63, 0.0  ;;  %v357_v10 = vmul.f32 0.1, %v293_v63 }
  0x23   : > { %vm326_vm10 = vcmp.gt.f32.partialorder %v294_v3, 0.0  ;;  %v358_v11 = vmul.f32 0.1, %v294_v3  ;;  %vm327_vm11 = vcmp.gt.f32.partialorder %v295_v4, 0.0  ;;  %v359_v12 = vmul.f32 0.1, %v295_v4 }
  0x24   : > { %v388_v13 = vsel %vm324_vm8, %v292_v62, %v356_v8  ;;  %v389_v14 = vsel %vm325_vm9, %v293_v63, %v357_v10  ;;  %vm328_vm12 = vcmp.gt.f32.partialorder %v296_v5, 0.0  ;;  %v360_v15 = vmul.f32 0.1, %v296_v5 }
  0x25   : > { %420 = vst [vmem:[%s678_s26 + $0x40] sm:$0xff] %v388_v13  ;;  %421 = vst [vmem:[%s678_s26 + $0x48] sm:$0xff] %v389_v14  ;;  %v390_v16 = vsel %vm326_vm10, %v294_v3, %v358_v11  ;;  %v391_v17 = vsel %vm327_vm11, %v295_v4, %v359_v12  ;;  %v297_v18 = vadd.f32 %v656_v9, %v258_v1  ;;  %v547_v23 = vunpack.c.l.bf16 %v584_v7  ;;  %v589_v1 = vld [vmem:[%s642_s18 + $0x68] sm:$0xff]  }
  0x26   : > { %v298_v19 = vadd.f32 %v656_v9, %v259_v6  ;;  %422 = vst [vmem:[%s678_s26 + $0x50] sm:$0xff] %v390_v16  ;;  %423 = vst [vmem:[%s678_s26 + $0x58] sm:$0xff] %v391_v17  ;;  %v392_v21 = vsel %vm328_vm12, %v296_v5, %v360_v15  ;;  %v260_v22 = vmul.f32 %v544_v2, %v647_v0  ;;  %v548_v24 = vunpack.c.h.bf16 %v584_v7  ;;  %v590_v2 = vld [vmem:[%s642_s18 + $0x70] sm:$0xff]  }
  0x27   : > { %424 = vst [vmem:[%s678_s26 + $0x60] sm:$0xff] %v392_v21  ;;  %vm329_vm13 = vcmp.gt.f32.partialorder %v297_v18, 0.0  ;;  %v361_v26 = vmul.f32 0.1, %v297_v18  ;;  %v261_v29 = vmul.f32 %v547_v23, %v647_v0  ;;  %v551_v31 = vunpack.c.l.bf16 %v585_v20  ;;  %v591_v21 = vld [vmem:[%s642_s18 + $0x78] sm:$0xff]  }
  0x28   : > { %vm330_vm14 = vcmp.gt.f32.partialorder %v298_v19, 0.0  ;;  %v362_v27 = vmul.f32 0.1, %v298_v19  ;;  %v299_v28 = vadd.f32 %v656_v9, %v260_v22  ;;  %v262_v30 = vmul.f32 %v548_v24, %v647_v0 }
  0x29   : > { %v393_v32 = vsel %vm329_vm13, %v297_v18, %v361_v26  ;;  %v552_v34 = vunpack.c.h.bf16 %v585_v20  ;;  %v555_v35 = vunpack.c.l.bf16 %v586_v25  ;;  %v300_v37 = vadd.f32 %v656_v9, %v261_v29 }
  0x2a   : > { %v394_v33 = vsel %vm330_vm14, %v298_v19, %v362_v27  ;;  %425 = vst [vmem:[%s678_s26 + $0x68] sm:$0xff] %v393_v32  ;;  %vm331_vm15 = vcmp.gt.f32.partialorder %v299_v28, 0.0  ;;  %v363_v36 = vmul.f32 0.1, %v299_v28  ;;  %v301_v38 = vadd.f32 %v656_v9, %v262_v30 }
  0x2b   : > { %426 = vst [vmem:[%s678_s26 + $0x70] sm:$0xff] %v394_v33  ;;  %v263_v39 = vmul.f32 %v551_v31, %v647_v0  ;;  %v264_v40 = vmul.f32 %v552_v34, %v647_v0  ;;  %v265_v41 = vmul.f32 %v555_v35, %v647_v0  ;;  %v556_v42 = vunpack.c.h.bf16 %v586_v25 }
  0x2c   : > { %v395_v44 = vsel %vm331_vm15, %v299_v28, %v363_v36  ;;  %vm332_vm0 = vcmp.gt.f32.partialorder %v300_v37, 0.0  ;;  %v364_v45 = vmul.f32 0.1, %v300_v37  ;;  %vm333_vm1 = vcmp.gt.f32.partialorder %v301_v38, 0.0 }
  0x2d   : > { %427 = vst [vmem:[%s678_s26 + $0x78] sm:$0xff] %v395_v44  ;;  %v365_v46 = vmul.f32 0.1, %v301_v38  ;;  %v302_v47 = vadd.f32 %v656_v9, %v263_v39  ;;  %v303_v48 = vadd.f32 %v656_v9, %v264_v40  ;;  %v304_v49 = vadd.f32 %v656_v9, %v265_v41 }
  0x2e   : > { %v396_v50 = vsel %vm332_vm0, %v300_v37, %v364_v45  ;;  %v266_v51 = vmul.f32 %v556_v42, %v647_v0  ;;  %v559_v52 = vunpack.c.l.bf16 %v587_v43  ;;  %v560_v53 = vunpack.c.h.bf16 %v587_v43 }
  0x2f   : > { %428 = vst [vmem:[%s678_s26 + $0x80] sm:$0xff] %v396_v50  ;;  %v397_v55 = vsel %vm333_vm1, %v301_v38, %v365_v46  ;;  %vm334_vm2 = vcmp.gt.f32.partialorder %v302_v47, 0.0  ;;  %v366_v56 = vmul.f32 0.1, %v302_v47  ;;  %vm335_vm3 = vcmp.gt.f32.partialorder %v303_v48, 0.0 }
  0x30   : > { %429 = vst [vmem:[%s678_s26 + $0x88] sm:$0xff] %v397_v55  ;;  %v367_v57 = vmul.f32 0.1, %v303_v48  ;;  %vm336_vm4 = vcmp.gt.f32.partialorder %v304_v49, 0.0  ;;  %v368_v58 = vmul.f32 0.1, %v304_v49  ;;  %v305_v59 = vadd.f32 %v656_v9, %v266_v51 }
  0x31   : > { %v398_v60 = vsel %vm334_vm2, %v302_v47, %v366_v56  ;;  %v267_v61 = vmul.f32 %v559_v52, %v647_v0  ;;  %v268_v62 = vmul.f32 %v560_v53, %v647_v0  ;;  %v563_v63 = vunpack.c.l.bf16 %v588_v54 }
  0x32   : > { %430 = vst [vmem:[%s678_s26 + $0x90] sm:$0xff] %v398_v60  ;;  %v399_v3 = vsel %vm335_vm3, %v303_v48, %v367_v57  ;;  %v400_v4 = vsel %vm336_vm4, %v304_v49, %v368_v58  ;;  %vm337_vm5 = vcmp.gt.f32.partialorder %v305_v59, 0.0  ;;  %v369_v5 = vmul.f32 0.1, %v305_v59 }
  0x33   : > { %431 = vst [vmem:[%s678_s26 + $0x98] sm:$0xff] %v399_v3  ;;  %432 = vst [vmem:[%s678_s26 + $0xa0] sm:$0xff] %v400_v4  ;;  %v306_v6 = vadd.f32 %v656_v9, %v267_v61  ;;  %v307_v7 = vadd.f32 %v656_v9, %v268_v62  ;;  %v269_v8 = vmul.f32 %v563_v63, %v647_v0  ;;  %v564_v10 = vunpack.c.h.bf16 %v588_v54 }
  0x34   : > { %v401_v11 = vsel %vm337_vm5, %v305_v59, %v369_v5  ;;  %v567_v12 = vunpack.c.l.bf16 %v589_v1  ;;  %v568_v13 = vunpack.c.h.bf16 %v589_v1  ;;  %v571_v14 = vunpack.c.l.bf16 %v590_v2 }
  0x35   : > { %433 = vst [vmem:[%s678_s26 + $0xa8] sm:$0xff] %v401_v11  ;;  %vm338_vm6 = vcmp.gt.f32.partialorder %v306_v6, 0.0  ;;  %v370_v15 = vmul.f32 0.1, %v306_v6  ;;  %vm339_vm7 = vcmp.gt.f32.partialorder %v307_v7, 0.0  ;;  %v308_v17 = vadd.f32 %v656_v9, %v269_v8 }
  0x36   : > { %v371_v16 = vmul.f32 0.1, %v307_v7  ;;  %v270_v18 = vmul.f32 %v564_v10, %v647_v0  ;;  %v271_v19 = vmul.f32 %v567_v12, %v647_v0  ;;  %v272_v20 = vmul.f32 %v568_v13, %v647_v0 }
  0x37   : > { %v402_v22 = vsel %vm338_vm6, %v306_v6, %v370_v15  ;;  %v273_v24 = vmul.f32 %v571_v14, %v647_v0  ;;  %v572_v25 = vunpack.c.h.bf16 %v590_v2  ;;  %vm340_vm8 = vcmp.gt.f32.partialorder %v308_v17, 0.0 }
  0x38   : > { %v403_v23 = vsel %vm339_vm7, %v307_v7, %v371_v16  ;;  %434 = vst [vmem:[%s678_s26 + $0xb0] sm:$0xff] %v402_v22  ;;  %v372_v26 = vmul.f32 0.1, %v308_v17  ;;  %v309_v27 = vadd.f32 %v656_v9, %v270_v18  ;;  %v310_v28 = vadd.f32 %v656_v9, %v271_v19 }
  0x39   : > { %435 = vst [vmem:[%s678_s26 + $0xb8] sm:$0xff] %v403_v23  ;;  %v311_v29 = vadd.f32 %v656_v9, %v272_v20  ;;  %v312_v30 = vadd.f32 %v656_v9, %v273_v24  ;;  %v274_v31 = vmul.f32 %v572_v25, %v647_v0  ;;  %v575_v32 = vunpack.c.l.bf16 %v591_v21 }
  0x3a   : > { %v404_v33 = vsel %vm340_vm8, %v308_v17, %v372_v26  ;;  %vm341_vm9 = vcmp.gt.f32.partialorder %v309_v27, 0.0  ;;  %v373_v34 = vmul.f32 0.1, %v309_v27  ;;  %vm342_vm10 = vcmp.gt.f32.partialorder %v310_v28, 0.0 }
  0x3b   : > { %436 = vst [vmem:[%s678_s26 + $0xc0] sm:$0xff] %v404_v33  ;;  %v374_v35 = vmul.f32 0.1, %v310_v28  ;;  %vm343_vm11 = vcmp.gt.f32.partialorder %v311_v29, 0.0  ;;  %v375_v36 = vmul.f32 0.1, %v311_v29  ;;  %v313_v39 = vadd.f32 %v656_v9, %v274_v31 }
  0x3c   : > { %vm344_vm12 = vcmp.gt.f32.partialorder %v312_v30, 0.0  ;;  %v405_v37 = vsel %vm341_vm9, %v309_v27, %v373_v34  ;;  %v376_v38 = vmul.f32 0.1, %v312_v30  ;;  %v275_v40 = vmul.f32 %v575_v32, %v647_v0 }
  0x3d   : > { %437 = vst [vmem:[%s678_s26 + $0xc8] sm:$0xff] %v405_v37  ;;  %v406_v41 = vsel %vm342_vm10, %v310_v28, %v374_v35  ;;  %v407_v42 = vsel %vm343_vm11, %v311_v29, %v375_v36  ;;  %v576_v43 = vunpack.c.h.bf16 %v591_v21  ;;  %vm345_vm13 = vcmp.gt.f32.partialorder %v313_v39, 0.0 }
  0x3e   : > { %438 = vst [vmem:[%s678_s26 + $0xd0] sm:$0xff] %v406_v41  ;;  %439 = vst [vmem:[%s678_s26 + $0xd8] sm:$0xff] %v407_v42  ;;  %v408_v44 = vsel %vm344_vm12, %v312_v30, %v376_v38  ;;  %v377_v45 = vmul.f32 0.1, %v313_v39  ;;  %v314_v46 = vadd.f32 %v656_v9, %v275_v40 }
  0x3f   : > { %440 = vst [vmem:[%s678_s26 + $0xe0] sm:$0xff] %v408_v44  ;;  %v276_v47 = vmul.f32 %v576_v43, %v647_v0 }
  0x40   : > { %v409_v48 = vsel %vm345_vm13, %v313_v39, %v377_v45  ;;  %vm346_vm14 = vcmp.gt.f32.partialorder %v314_v46, 0.0  ;;  %v378_v49 = vmul.f32 0.1, %v314_v46 }
  0x41   : > { %441 = vst [vmem:[%s678_s26 + $0xe8] sm:$0xff] %v409_v48  ;;  %v315_v50 = vadd.f32 %v656_v9, %v276_v47 }
  0x42   : > { %v410_v51 = vsel %vm346_vm14, %v314_v46, %v378_v49 }
  0x43   : > { %442 = vst [vmem:[%s678_s26 + $0xf0] sm:$0xff] %v410_v51  ;;  %vm347_vm15 = vcmp.gt.f32.partialorder %v315_v50, 0.0  ;;  %v379_v52 = vmul.f32 0.1, %v315_v50 }
  0x45   : > { %v411_v53 = vsel %vm347_vm15, %v315_v50, %v379_v52 }
  0x46   : > { %443 = vst [vmem:[%s678_s26 + $0xf8] sm:$0xff] %v411_v53 }
  0x47 PF: > { %s13_s12 = sadd.s32 1, %s606_s12  }
  0x48   : > { %p10_p4 = scmp.ge.s32.totalorder %s13_s12, 4  }
  0x4a   :  { %12 = sbr.rel (!%p10_p4) target bundleno = 1 (0x1), region = 62 }

// kernel: cnn_block.2
= control target key start
LH: loop header
LB: loop body
LE: loop exit
PB: predicated region body
PF: predicated region fallthrough
CT: control target
= control target key end

     0   :  { %s864_s12 = smov 0   ;;  %s940_s0 = inlined_call_operand.vmem [shape: bf16[512,128], index: 0, kind: input, shape index: {}]   ;;  %s941_s1 = inlined_call_operand.vmem [shape: bf16[128,128], index: 1, kind: input, shape index: {}]   ;;  %s942_s2 = inlined_call_operand.vmem [shape: bf16[512,128], index: 2, kind: output, shape index: {0}]   ;;  %s943_s3 = inlined_call_operand.vmem [shape: f32[32,128], index: 3, kind: output, shape index: {1}]  }
   0x1 LB: > { %s870_s13 = sadd.s32 4294967295, %s842_s12   ;;  %p645_p0 = scmp.ge.s32.totalorder %s842_s12, 1  ;;  %s842_s12 = sphi %s864_s12, %s14_s12  }
   0x2   : > { %p141_p1 = scmp.lt.s32.totalorder %s842_s12, 5 }
   0x4   : > { %p142_p2 = pnand %p645_p0, %p141_p1 }
   0x5   : > { %v820_v0 = vld [vmem:[%s941_s1] sm:$0xff] (!%p142_p2)   ;;  %s646_s16 = sshll.u32 (!%p142_p2), %s870_s13, 4  ;;  %v821_v1 = vld [vmem:[%s941_s1 + $0x8] sm:$0xff] (!%p142_p2)   ;;  %v822_v2 = vld [vmem:[%s941_s1 + $0x10] sm:$0xff] (!%p142_p2)   ;;  %p181_p4 = scmp.lt.s32.totalorder (!%p142_p2), %s870_s13, 3  ;;  %vm469_vm0 = vcmask (!%p142_p2), 1040384  }
   0x6   : > { %145 = sbr.rel (%p142_p2) target bundleno = 300 (0x12c), region = 28  ;;  %p170_p3 = scmp.lt.s32.totalorder (!%p142_p2), %s646_s16, 63  ;;  %764 = vmatprep.subr.bf16.mxu0 (!%p142_p2), %v820_v0  ;;  %796 = vmatprep.subr.bf16.mxu1 (!%p142_p2), %v820_v0  ;;  %v823_v3 = vld [vmem:[%s941_s1 + $0x18] sm:$0xff] (!%p142_p2)   ;;  %v824_v5 = vld [vmem:[%s941_s1 + $0x20] sm:$0xff] (!%p142_p2)   ;;  %v825_v7 = vld [vmem:[%s941_s1 + $0x28] sm:$0xff] (!%p142_p2)   ;;  %vm471_vm1 = vcmask (!%p142_p2), 1041408  }
   0x7   : > { %765 = vmatpush3.bf16.msra.mxu0 (!%p142_p2), %v820_v0  ;;  %804 = vmatpush3.bf16.msra.mxu1 (!%p142_p2), %v820_v0  ;;  %v826_v8 = vld [vmem:[%s941_s1 + $0x30] sm:$0xff] (!%p142_p2)   ;;  %v827_v9 = vld [vmem:[%s941_s1 + $0x38] sm:$0xff] (!%p142_p2)  }
   0x8   : > { %766 = vmatprep.subr.bf16.mxu0 (!%p142_p2), %v821_v1  ;;  %797 = vmatprep.subr.bf16.mxu1 (!%p142_p2), %v821_v1 }
   0xb   : > { %767 = vmatpush3.bf16.msra.mxu0 (!%p142_p2), %v821_v1  ;;  %805 = vmatpush3.bf16.msra.mxu1 (!%p142_p2), %v821_v1 }
   0xc   : > { %768 = vmatprep.subr.bf16.mxu0 (!%p142_p2), %v822_v2  ;;  %798 = vmatprep.subr.bf16.mxu1 (!%p142_p2), %v822_v2 }
   0xd   : > { %s945_s16 = smov (!%p170_p3, %s646_s16), 63  ;;  %s947_s13 = smov (!%p181_p4, %s870_s13), 3 }
   0xe   : > { %s647_s21 = sshll.u32 %s945_s16, 2  ;;  %s650_s11 = sshll.u32 %s947_s13, 3 }
   0xf   : > { %s892_s24 = scalar_lea.vmem %s940_s0, %s647_s21  ;;  %769 = vmatpush3.bf16.msra.mxu0 %v822_v2  ;;  %806 = vmatpush3.bf16.msra.mxu1 %v822_v2  ;;  %s922_s10 = scalar_lea.vmem %s942_s2, %s647_s21 }
  0x10   : > { %v828_v4 = vld [vmem:[%s892_s24] sm:$0xff]   ;;  %770 = vmatprep.subr.bf16.mxu0 %v823_v3  ;;  %799 = vmatprep.subr.bf16.mxu1 %v823_v3  ;;  %v829_v10 = vld [vmem:[%s892_s24 + $0x8] sm:$0xff]   ;;  %v830_v12 = vld [vmem:[%s892_s24 + $0x10] sm:$0xff]   ;;  %s184_s16 = scalar_lea.vmem %s943_s3, %s650_s11 }
  0x11   : > { %780 = vmatprep.mubr.bf16.mxu0 %v828_v4  ;;  %v832_v6 = vld [vmem:[%s892_s24 + $0x20] sm:$0xff]   ;;  %v833_v11 = vld [vmem:[%s892_s24 + $0x28] sm:$0xff]   ;;  %v834_v13 = vld [vmem:[%s892_s24 + $0x30] sm:$0xff]  }
  0x12   : > { %788 = vmatprep.mubr.bf16.mxu1 %v832_v6  ;;  %v831_v14 = vld [vmem:[%s892_s24 + $0x18] sm:$0xff]  }
  0x13   : > { %771 = vmatpush3.bf16.msra.mxu0 %v823_v3  ;;  %807 = vmatpush3.bf16.msra.mxu1 %v823_v3  ;;  %v835_v15 = vld [vmem:[%s892_s24 + $0x38] sm:$0xff]  }
  0x14   : > { %772 = vmatprep.subr.bf16.mxu0 %v824_v5  ;;  %800 = vmatprep.subr.bf16.mxu1 %v824_v5 }
  0x17   : > { %773 = vmatpush3.bf16.msra.mxu0 %v824_v5  ;;  %808 = vmatpush3.bf16.msra.mxu1 %v824_v5 }
  0x18   : > { %774 = vmatprep.subr.bf16.mxu0 %v825_v7  ;;  %801 = vmatprep.subr.bf16.mxu1 %v825_v7 }
  0x1b   : > { %775 = vmatpush3.bf16.msra.mxu0 %v825_v7  ;;  %809 = vmatpush3.bf16.msra.mxu1 %v825_v7 }
  0x1c   : > { %776 = vmatprep.subr.bf16.mxu0 %v826_v8  ;;  %802 = vmatprep.subr.bf16.mxu1 %v826_v8 }
  0x1f   : > { %777 = vmatpush3.bf16.msra.mxu0 %v826_v8  ;;  %810 = vmatpush3.bf16.msra.mxu1 %v826_v8 }
  0x20   : > { %778 = vmatprep.subr.bf16.mxu0 %v827_v9  ;;  %803 = vmatprep.subr.bf16.mxu1 %v827_v9 }
  0x23   : > { %779 = vmatpush3.bf16.msra.mxu0 %v827_v9  ;;  %811 = vmatpush3.bf16.msra.mxu1 %v827_v9 }
  0x26   : > { %781 = vmatmul.mubr.bf16.vlgmr.msra.gmra.mrb[0].mxu0 %v829_v10  ;;  %789 = vmatmul.mubr.bf16.vlgmr.msra.gmra.mrb[0].mxu1 %v833_v11 }
  0x27   : > { %784 = vmatprep.mubr.bf16.mxu0 %v830_v12  ;;  %792 = vmatprep.mubr.bf16.mxu1 %v834_v13 }
  0x2e   : > { %785 = vmatmul.mubr.bf16.gmra.mrb[4].mxu0 %v831_v14  ;;  %793 = vmatmul.mubr.bf16.gmra.mrb[4].mxu1 %v835_v15 }
  0xf9   : > { %v782_v16 = vpop.f32.mrb[0].mxu0  ;;  %v790_v17 = vpop.f32.mrb[0].mxu1 }
  0xfa   : > { %v348_v18 = vpop.f32.mrb[1].mxu0  ;;  %v380_v19 = vpop.f32.mrb[1].mxu1  ;;  %v434_v31 = vmul.f32 %v782_v16, %v782_v16  ;;  %v442_v3 = vmul.f32 %v790_v17, %v790_v17 }
  0xfb   : > { %v783_v20 = vpop.f32.mrb[2].mxu0  ;;  %v791_v21 = vpop.f32.mrb[2].mxu1  ;;  %v432_v26 = vmul.f32 %v348_v18, %v348_v18  ;;  %v440_v61 = vmul.f32 %v380_v19, %v380_v19 }
  0xfc   : > { %v709_v22 = vpack.c.bf16 %v783_v20, %v782_v16  ;;  %v351_v23 = vpop.f32.mrb[3].mxu0  ;;  %v729_v24 = vpack.c.bf16 %v791_v21, %v790_v17  ;;  %v383_v25 = vpop.f32.mrb[3].mxu1  ;;  %v435_v34 = vmul.f32 %v783_v20, %v783_v20  ;;  %v443_v6 = vmul.f32 %v791_v21, %v791_v21 }
  0xfd   : > { %v411_v27 = vadd.f32 %v351_v23, %v348_v18  ;;  %v433_v28 = vmul.f32 %v351_v23, %v351_v23  ;;  %v704_v29 = vpack.c.bf16 %v351_v23, %v348_v18  ;;  %v724_v30 = vpack.c.bf16 %v383_v25, %v380_v19 }
  0xfe   : > { %741 = vst [vmem:[%s922_s10 + $0x8] sm:$0xff] %v709_v22   ;;  %745 = vst [vmem:[%s922_s10 + $0x28] sm:$0xff] %v729_v24   ;;  %v441_v2 = vmul.f32 %v383_v25, %v383_v25 }
  0xff   : > { %v412_v32 = vadd.f32 %v782_v16, %v411_v27  ;;  %v448_v33 = vadd.f32 %v433_v28, %v432_v26  ;;  %705 = vst [vmem:[%s922_s10] sm:$0xff] %v704_v29   ;;  %744 = vst [vmem:[%s922_s10 + $0x20] sm:$0xff] %v724_v30  }
 0x101   : > { %v449_v35 = vadd.f32 %v448_v33, %v434_v31  ;;  %v786_v36 = vpop.f32.mrb[4].mxu0  ;;  %v413_v37 = vadd.f32 %v783_v20, %v412_v32  ;;  %v794_v38 = vpop.f32.mrb[4].mxu1 }
 0x102   : > { %v364_v39 = vpop.f32.mrb[5].mxu0  ;;  %v396_v40 = vpop.f32.mrb[5].mxu1  ;;  %v438_v55 = vmul.f32 %v786_v36, %v786_v36  ;;  %v446_v15 = vmul.f32 %v794_v38, %v794_v38 }
 0x103   : > { %v414_v41 = vadd.f32 %v413_v37, %v364_v39  ;;  %v436_v42 = vmul.f32 %v364_v39, %v364_v39  ;;  %v450_v43 = vadd.f32 %v449_v35, %v435_v34  ;;  %v787_v44 = vpop.f32.mrb[6].mxu0  ;;  %v795_v45 = vpop.f32.mrb[6].mxu1  ;;  %v444_v9 = vmul.f32 %v396_v40, %v396_v40 }
 0x104   : > { %v719_v46 = vpack.c.bf16 %v787_v44, %v786_v36  ;;  %v367_v47 = vpop.f32.mrb[7].mxu0  ;;  %v739_v48 = vpack.c.bf16 %v795_v45, %v794_v38  ;;  %v399_v49 = vpop.f32.mrb[7].mxu1  ;;  %v439_v58 = vmul.f32 %v787_v44, %v787_v44 }
 0x105   : > { %v451_v50 = vadd.f32 %v450_v43, %v436_v42  ;;  %v415_v51 = vadd.f32 %v414_v41, %v367_v47  ;;  %v437_v52 = vmul.f32 %v367_v47, %v367_v47  ;;  %v714_v53 = vpack.c.bf16 %v367_v47, %v364_v39 }
 0x106   : > { %743 = vst [vmem:[%s922_s10 + $0x18] sm:$0xff] %v719_v46   ;;  %747 = vst [vmem:[%s922_s10 + $0x38] sm:$0xff] %v739_v48   ;;  %v734_v54 = vpack.c.bf16 %v399_v49, %v396_v40  ;;  %v445_v14 = vmul.f32 %v399_v49, %v399_v49 }
 0x107   : > { %v416_v56 = vadd.f32 %v786_v36, %v415_v51  ;;  %v452_v57 = vadd.f32 %v451_v50, %v437_v52  ;;  %742 = vst [vmem:[%s922_s10 + $0x10] sm:$0xff] %v714_v53  }
 0x108   : > { %746 = vst [vmem:[%s922_s10 + $0x30] sm:$0xff] %v734_v54  }
 0x109   : > { %v453_v59 = vadd.f32 %v452_v57, %v438_v55  ;;  %v417_v60 = vadd.f32 %v787_v44, %v416_v56 }
 0x10b   : > { %v418_v62 = vadd.f32 %v417_v60, %v380_v19  ;;  %v454_v63 = vadd.f32 %v453_v59, %v439_v58  ;;  %v447_v19 = vmul.f32 %v795_v45, %v795_v45 }
 0x10d   : > { %v455_v0 = vadd.f32 %v454_v63, %v440_v61  ;;  %v419_v1 = vadd.f32 %v418_v62, %v383_v25 }
 0x10f   : > { %v420_v4 = vadd.f32 %v790_v17, %v419_v1  ;;  %v456_v5 = vadd.f32 %v455_v0, %v441_v2 }
 0x111   : > { %v457_v7 = vadd.f32 %v456_v5, %v442_v3  ;;  %v421_v8 = vadd.f32 %v791_v21, %v420_v4 }
 0x113   : > { %v422_v10 = vadd.f32 %v421_v8, %v396_v40  ;;  %v458_v11 = vadd.f32 %v457_v7, %v443_v6 }
 0x115   : > { %v459_v12 = vadd.f32 %v458_v11, %v444_v9  ;;  %v423_v13 = vadd.f32 %v422_v10, %v399_v49 }
 0x117   : > { %v424_v16 = vadd.f32 %v794_v38, %v423_v13  ;;  %v460_v18 = vadd.f32 %v459_v12, %v445_v14 }
 0x119   : > { %v425_v20 = vadd.f32 %v795_v45, %v424_v16  ;;  %v461_v22 = vadd.f32 %v460_v18, %v446_v15 }
 0x11b   : > { %v426_v23 = vrot.slane %v425_v20, 4  ;;  %v462_v17 = vadd.f32 %v461_v22, %v447_v19 }
 0x11d   : > { %v427_v24 = vadd.f32 %v426_v23, %v425_v20  ;;  %v463_v25 = vrot.slane %v462_v17, 4 }
 0x11f   : > { %v428_v26 = vrot.slane %v427_v24, 2  ;;  %v464_v21 = vadd.f32 %v463_v25, %v462_v17 }
 0x121   : > { %v429_v27 = vadd.f32 %v428_v26, %v427_v24  ;;  %v465_v28 = vrot.slane %v464_v21, 2 }
 0x123   : > { %v430_v29 = vrot.slane %v429_v27, 1  ;;  %v466_v30 = vadd.f32 %v465_v28, %v464_v21 }
 0x125   : > { %v467_v31 = vrot.slane %v466_v30, 1  ;;  %v431_v32 = vadd.f32 %v430_v29, %v429_v27 }
 0x127   : > { %v468_v33 = vadd.f32 %v467_v31, %v466_v30 }
 0x129   : > { %v470_v34 = vsel %vm469_vm0, %v431_v32, %v468_v33 }
 0x12a   : > { %v472_v35 = vsel %vm471_vm1, %v470_v34, 0.0 }
 0x12b   : > { %473 = vst [vmem:[%s184_s16] sm:$0xff] %v472_v35 }
 0x12c PF: > { %s14_s12 = sadd.s32 1, %s842_s12  }
 0x12d   : > { %p11_p5 = scmp.ge.s32.totalorder %s14_s12, 6  }
 0x12f   :  { %13 = sbr.rel (!%p11_p5) target bundleno = 1 (0x1), region = 70 }

</bundles_post_ra>
